<compile_context>
chip_gen: v7x
topology: tpu7x:2x2x1
jax: 0.10.0
libtpu: 0.0.40
codegen_flags: <defaults>
</compile_context>

<pallas_src>
import functools
import math

import jax
import jax.numpy as jnp
from jax import lax
from jax.experimental import pallas as pl
from jax.experimental.pallas import tpu as pltpu


# ---------------------------------------------------------------------------
# Helpers
# ---------------------------------------------------------------------------

def _round_up(x, m):
    return ((x + m - 1) // m) * m


def _choose_batch_tile(batch, feat, itemsize, *, vmem_budget_bytes=8 << 20,
                       max_tile=32768, prefer_two_steps=True):
    """Pick the batch tile (lane axis of the feature-major kernel).

    * Tiles are sized so (in + out) x double-buffer stays within a few MiB of
      VMEM -> per-step DMA time comfortably exceeds the ~0.35us step overhead.
    * Keep an even number of >=2 "parallel" grid steps when the batch allows
      it (v7x megacore: both TensorCores get equal work).
    * Awkward batch sizes are handled by padding (see caller), never by one
      giant single tile.
    Returns (tile, padded_batch).
    """
    b128 = _round_up(max(int(batch), 1), 128)
    cap = (vmem_budget_bytes // (4 * feat * itemsize)) // 128 * 128
    cap = max(128, min(cap, max_tile))
    n_steps = -(-b128 // cap)                       # ceil division
    if prefer_two_steps:
        if n_steps == 1 and b128 >= 256:
            n_steps = 2                             # split for v7x's 2 TCs
        elif n_steps > 1 and n_steps % 2 == 1:
            n_steps += 1                            # even step count
    tile = _round_up(-(-b128 // n_steps), 128)
    padded = n_steps * tile
    return tile, padded


def _mlp_tail(x_f32, param_vals, matmul_dtype, feature_major):
    """dynamics_network(x): matmuls with f32 MXU accumulation, f32 SiLU/Tanh.

    feature_major:  x_f32 (D, TB), weights (out, in)  -> y = W @ x
    batch_major:    x_f32 (TB, D), weights (in, out)  -> y = x @ W
    Biases are f32, shaped to broadcast against the accumulator.
    """
    n = len(param_vals) // 2
    h = x_f32.astype(matmul_dtype)
    y = None
    for layer in range(n):
        w = param_vals[2 * layer]
        b = param_vals[2 * layer + 1]
        if feature_major:
            y = jnp.dot(w, h, preferred_element_type=jnp.float32) + b
        else:
            y = jnp.dot(h, w, preferred_element_type=jnp.float32) + b
        if layer < n - 1:
            y = y * jax.nn.sigmoid(y)               # SiLU in f32 (safe on v5e)
            h = y.astype(matmul_dtype)
        else:
            y = jnp.tanh(y)                         # final Tanh in f32
    return y


# ---------------------------------------------------------------------------
# Kernels
# ---------------------------------------------------------------------------

def _ode_fwd_kernel(matmul_dtype, feature_major, *refs):
    """refs = (z_ref, w0, b0, ..., w_{L-1}, b_{L-1}, out_ref)."""
    z_ref, out_ref = refs[0], refs[-1]
    param_vals = [r[...] for r in refs[1:-1]]
    x = z_ref[...].astype(jnp.float32)              # residual stays f32
    f = _mlp_tail(x, param_vals, matmul_dtype, feature_major)
    out_ref[...] = (x + f).astype(out_ref.dtype)    # z + dynamics_network(z)


def _ode_euler_kernel(matmul_dtype, num_steps, dt, *refs):
    """Fused explicit-Euler integrator (feature-major state kept in VMEM).

    z_{n+1} = z_n + dt * forward(t, z_n) = z_n + dt * (z_n + dyn(z_n))
    """
    z_ref, out_ref = refs[0], refs[-1]
    param_vals = [r[...] for r in refs[1:-1]]       # weights resident across steps

    def step(zc):
        f = _mlp_tail(zc, param_vals, matmul_dtype, True)
        return zc + dt * (zc + f)

    z = z_ref[...].astype(jnp.float32)
    if num_steps <= 8:
        for _ in range(num_steps):                  # short static unroll
            z = step(z)
    else:
        z = lax.fori_loop(0, num_steps, lambda _, zc: step(zc), z)
    out_ref[...] = z.astype(out_ref.dtype)


# ---------------------------------------------------------------------------
# Wrappers
# ---------------------------------------------------------------------------

def _pallas_ode_call(kernel, z, weights, biases, *, feature_major,
                     batch_tile, matmul_dtype, rhs_evals=1):
    assert z.ndim == 2
    if feature_major:
        feat, batch = z.shape
        batch_axis = 1
    else:
        batch, feat = z.shape
        batch_axis = 0
    num_linear = len(weights)
    assert len(biases) == num_linear
    assert weights[0].shape[1] == feat and weights[-1].shape[0] == feat

    mm_dtype = matmul_dtype if matmul_dtype is not None else z.dtype
    if feature_major:
        w_cast = [jnp.asarray(w, mm_dtype) for w in weights]               # (out, in)
        b_cast = [jnp.asarray(b, jnp.float32).reshape(-1, 1) for b in biases]
    else:
        w_cast = [jnp.asarray(w, mm_dtype).T for w in weights]             # (in, out)
        b_cast = [jnp.asarray(b, jnp.float32).reshape(1, -1) for b in biases]

    itemsize = z.dtype.itemsize
    if batch_tile is None:
        tile, padded = _choose_batch_tile(batch, feat, itemsize)
    else:
        assert batch_tile % 128 == 0, "batch_tile must be a multiple of 128"
        tile = int(batch_tile)
        padded = _round_up(batch, tile)

    z_in = z
    if padded != batch:                              # pad instead of one huge tile
        pads = [(0, 0), (0, 0)]
        pads[batch_axis] = (0, padded - batch)
        z_in = jnp.pad(z, pads)
    grid = (padded // tile,)

    if feature_major:
        z_block, z_map = (feat, tile), (lambda i: (0, i))
        out_shape = jax.ShapeDtypeStruct((feat, padded), z.dtype)
    else:
        z_block, z_map = (tile, feat), (lambda i: (i, 0))
        out_shape = jax.ShapeDtypeStruct((padded, feat), z.dtype)

    in_specs = [pl.BlockSpec(z_block, z_map)]
    operands = [z_in]
    for w, b in zip(w_cast, b_cast):
        in_specs.append(pl.BlockSpec(w.shape, lambda i: (0, 0)))            # grid-invariant
        in_specs.append(pl.BlockSpec(b.shape, lambda i: (0, 0)))
        operands.extend([w, b])
    out_spec = pl.BlockSpec(z_block, z_map)

    param_bytes = sum(int(a.size) * a.dtype.itemsize for a in w_cast + b_cast)
    # in + out tiles, double-buffered, plus params (double-buffered) + slack.
    vmem_est = 4 * feat * tile * itemsize + 2 * param_bytes + (2 << 20)
    vmem_limit = int(min(max(vmem_est, 32 << 20), 48 << 20))  # explicit: v7x = 64 MiB phys

    flops = 2 * padded * sum(w.shape[0] * w.shape[1] for w in weights) * rhs_evals
    transcend = padded * sum(w.shape[0] for w in weights) * rhs_evals
    bytes_acc = 2 * padded * feat * itemsize + param_bytes
    cost = pl.CostEstimate(flops=int(flops), transcendentals=int(transcend),
                           bytes_accessed=int(bytes_acc))

    out = pl.pallas_call(
        kernel,
        out_shape=out_shape,
        grid_spec=pltpu.PrefetchScalarGridSpec(
            num_scalar_prefetch=0,
            grid=grid,
            in_specs=in_specs,
            out_specs=out_spec,
        ),
        compiler_params=pltpu.CompilerParams(
            dimension_semantics=("parallel",),
            vmem_limit_bytes=vmem_limit,
        ),
        cost_estimate=cost,
    )(*operands)

    if padded != batch:
        out = out[:, :batch] if feature_major else out[:batch, :]
    return out


def ode_forward_t(zT, weights, biases, *, batch_tile=None, matmul_dtype=None):
    """Feature-major fast path.  zT: (D, B); weights[i]: (out_i, in_i) (PyTorch layout)."""
    kernel = functools.partial(
        _ode_fwd_kernel, matmul_dtype if matmul_dtype is not None else zT.dtype, True)
    return _pallas_ode_call(kernel, zT, weights, biases, feature_major=True,
                            batch_tile=batch_tile, matmul_dtype=matmul_dtype)


def ode_forward(z, weights, biases, *, batch_tile=None, matmul_dtype=None):
    """Batch-major API matching the PyTorch module.  z: (B, D).

    Computes entirely in batch-major layout (no HBM transposes anywhere).
    Integrator loops should keep state feature-major and call ode_forward_t
    (or ode_euler_steps_t) instead.  On v6e/v7x/v5e pass
    matmul_dtype=jnp.bfloat16 (and/or bf16 z) to cut HBM traffic; the residual
    and elementwise math stay f32.
    """
    kernel = functools.partial(
        _ode_fwd_kernel, matmul_dtype if matmul_dtype is not None else z.dtype, False)
    return _pallas_ode_call(kernel, z, weights, biases, feature_major=False,
                            batch_tile=batch_tile, matmul_dtype=matmul_dtype)


def ode_euler_steps_t(zT, weights, biases, *, dt, num_steps,
                      batch_tile=None, matmul_dtype=None):
    """Fused integrator: num_steps explicit-Euler steps of dz/dt = forward(t, z)
    in ONE pallas_call, state tile resident in VMEM across RHS evaluations."""
    kernel = functools.partial(
        _ode_euler_kernel, matmul_dtype if matmul_dtype is not None else zT.dtype,
        int(num_steps), float(dt))
    return _pallas_ode_call(kernel, zT, weights, biases, feature_major=True,
                            batch_tile=batch_tile, matmul_dtype=matmul_dtype,
                            rhs_evals=int(num_steps))


# ---------------------------------------------------------------------------
# Reference + init (pure JAX, for verification)
# ---------------------------------------------------------------------------

def init_params(key, latent_dim, code_dim, num_hidden, num_layers):
    """Deterministic synthetic init mirroring nn.Linear shapes ((out, in))."""
    D = latent_dim + code_dim
    dims = [D] + [num_hidden] * num_layers + [D]
    weights, biases = [], []
    for i in range(len(dims) - 1):
        key, kw, kb = jax.random.split(key, 3)
        bound = 1.0 / math.sqrt(dims[i])
        w = jax.random.uniform(kw, (dims[i + 1], dims[i]),
                               minval=-bound, maxval=bound, dtype=jnp.float32)
        b = jax.random.uniform(kb, (dims[i + 1],),
                               minval=-bound, maxval=bound, dtype=jnp.float32)
        weights.append(w)
        biases.append(b)
    return weights, biases


def ode_forward_ref(z, weights, biases):
    h = z
    n = len(weights)
    for i, (w, b) in enumerate(zip(weights, biases)):
        h = h @ w.T + b
        h = jnp.tanh(h) if i == n - 1 else h * jax.nn.sigmoid(h)
    return z + h


# ---------------------------------------------------------------------------
# Self-test
# ---------------------------------------------------------------------------

if __name__ == "__main__":
    key = jax.random.PRNGKey(0)

    # Config consistent with the module: D = latent_dim + code_dim = 16
    latent_dim, code_dim = 8, 8
    num_hidden = 32
    num_layers = 2   # Linear(16,32) SiLU, Linear(32,32) SiLU, Linear(32,16) Tanh

    key, kp = jax.random.split(key)
    weights, biases = init_params(kp, latent_dim, code_dim, num_hidden, num_layers)

    # Tolerances: the kernel accumulates in f32 on the MXU; the XLA reference's
    # f32 matmul pass-decomposition may differ slightly, so f32 checks use a
    # tolerance that covers either precision mode while still catching any
    # structural error (residual/bias/activation), which would be O(0.1-1).
    TOL_F32 = dict(atol=2e-2, rtol=2e-2)

    # --- batch-major API, tiny batch (padded to one 128-lane tile) ---
    key, kz = jax.random.split(key)
    z_small = jax.random.normal(kz, (8, latent_dim + code_dim), dtype=jnp.float32)
    out_small = jax.block_until_ready(ode_forward(z_small, weights, biases))
    ref_small = ode_forward_ref(z_small, weights, biases)
    assert out_small.shape == z_small.shape
    assert jnp.allclose(out_small, ref_small, **TOL_F32), "f32 small mismatch"

    # --- batch-major, batch NOT a multiple of 128 (exercises pad + 2-step grid) ---
    key, kz2 = jax.random.split(key)
    z_odd = jax.random.normal(kz2, (300, latent_dim + code_dim), dtype=jnp.float32)
    out_odd = jax.block_until_ready(ode_forward(z_odd, weights, biases))
    ref_odd = ode_forward_ref(z_odd, weights, biases)
    assert out_odd.shape == z_odd.shape
    assert jnp.allclose(out_odd, ref_odd, **TOL_F32), "f32 padded-batch mismatch"

    # --- feature-major fast path (integrator layout), multi-tile parallel grid ---
    key, kz3 = jax.random.split(key)
    z_big = jax.random.normal(kz3, (256, latent_dim + code_dim), dtype=jnp.float32)
    ref_big = ode_forward_ref(z_big, weights, biases)
    outT = jax.block_until_ready(ode_forward_t(jnp.transpose(z_big), weights, biases))
    assert jnp.allclose(jnp.transpose(outT), ref_big, **TOL_F32), "feature-major mismatch"

    # --- bf16 matmul operands, z/residual kept f32 (v5e/v6e/v7x MXU-native) ---
    out_bf = jax.block_until_ready(
        ode_forward(z_big, weights, biases, matmul_dtype=jnp.bfloat16))
    assert jnp.allclose(out_bf, ref_big, atol=7e-2, rtol=7e-2), "bf16-matmul mismatch"

    # --- fused Euler integrator: 4 RHS evaluations in one pallas_call ---
    dt, nsteps = 0.05, 4
    eulT = jax.block_until_ready(
        ode_euler_steps_t(jnp.transpose(z_big), weights, biases, dt=dt, num_steps=nsteps))
    z_ref = z_big
    for _ in range(nsteps):
        z_ref = z_ref + dt * ode_forward_ref(z_ref, weights, biases)
    assert jnp.allclose(jnp.transpose(eulT), z_ref, atol=5e-2, rtol=5e-2), "euler mismatch"

    print("KERNEL_OK")
</pallas_src>

<mosaic_0001>
module attributes {stable_mosaic.version = 11 : i64} {
  func.func @_ode_fwd_kernel(%arg0: i32, %arg1: memref<128x16xf32, #tpu.memory_space<vmem>>, %arg2: memref<16x32xf32, #tpu.memory_space<vmem>>, %arg3: memref<1x32xf32, #tpu.memory_space<vmem>>, %arg4: memref<32x32xf32, #tpu.memory_space<vmem>>, %arg5: memref<1x32xf32, #tpu.memory_space<vmem>>, %arg6: memref<32x16xf32, #tpu.memory_space<vmem>>, %arg7: memref<1x16xf32, #tpu.memory_space<vmem>>, %arg8: memref<128x16xf32, #tpu.memory_space<vmem>>) attributes {dimension_semantics = [#tpu.dimension_semantics<parallel>], iteration_bounds = array<i64: 1>, scalar_prefetch = 0 : i64, scratch_operands = 0 : i64, tpu.core_type = #tpu.core_type<tc>, window_params = [{transform_indices = @transform_0, window_bounds = array<i64: 128, 16>}, {pipeline_mode = #tpu.pipeline_mode<synchronous>, transform_indices = @transform_1, window_bounds = array<i64: 16, 32>}, {pipeline_mode = #tpu.pipeline_mode<synchronous>, transform_indices = @transform_2, window_bounds = array<i64: 1, 32>}, {pipeline_mode = #tpu.pipeline_mode<synchronous>, transform_indices = @transform_3, window_bounds = array<i64: 32, 32>}, {pipeline_mode = #tpu.pipeline_mode<synchronous>, transform_indices = @transform_4, window_bounds = array<i64: 1, 32>}, {pipeline_mode = #tpu.pipeline_mode<synchronous>, transform_indices = @transform_5, window_bounds = array<i64: 32, 16>}, {pipeline_mode = #tpu.pipeline_mode<synchronous>, transform_indices = @transform_6, window_bounds = array<i64: 1, 16>}, {transform_indices = @transform_7, window_bounds = array<i64: 128, 16>}]} {
    %c0 = arith.constant 0 : index
    %c0_0 = arith.constant 0 : index
    %0 = vector.load %arg2[%c0, %c0_0] : memref<16x32xf32, #tpu.memory_space<vmem>>, vector<16x32xf32>
    %c0_1 = arith.constant 0 : index
    %c0_2 = arith.constant 0 : index
    %1 = vector.load %arg3[%c0_1, %c0_2] : memref<1x32xf32, #tpu.memory_space<vmem>>, vector<1x32xf32>
    %c0_3 = arith.constant 0 : index
    %c0_4 = arith.constant 0 : index
    %2 = vector.load %arg4[%c0_3, %c0_4] : memref<32x32xf32, #tpu.memory_space<vmem>>, vector<32x32xf32>
    %c0_5 = arith.constant 0 : index
    %c0_6 = arith.constant 0 : index
    %3 = vector.load %arg5[%c0_5, %c0_6] : memref<1x32xf32, #tpu.memory_space<vmem>>, vector<1x32xf32>
    %c0_7 = arith.constant 0 : index
    %c0_8 = arith.constant 0 : index
    %4 = vector.load %arg6[%c0_7, %c0_8] : memref<32x16xf32, #tpu.memory_space<vmem>>, vector<32x16xf32>
    %c0_9 = arith.constant 0 : index
    %c0_10 = arith.constant 0 : index
    %5 = vector.load %arg7[%c0_9, %c0_10] : memref<1x16xf32, #tpu.memory_space<vmem>>, vector<1x16xf32>
    %c0_11 = arith.constant 0 : index
    %c0_12 = arith.constant 0 : index
    %6 = vector.load %arg1[%c0_11, %c0_12] : memref<128x16xf32, #tpu.memory_space<vmem>>, vector<128x16xf32>
    %cst = arith.constant dense<0.000000e+00> : vector<128x32xf32>
    %7 = tpu.matmul %6, %0, %cst {dimension_numbers = #tpu.dot_dimension_numbers<[1], [0], [0], [1], [0, 0, 1, 1], [], []>} : vector<128x16xf32>, vector<16x32xf32>, vector<128x32xf32> -> vector<128x32xf32>
    %8 = vector.broadcast %1 : vector<1x32xf32> to vector<128x32xf32>
    %9 = arith.addf %7, %8 : vector<128x32xf32>
    %10 = arith.negf %9 : vector<128x32xf32>
    %11 = math.exp %10 : vector<128x32xf32>
    %cst_13 = arith.constant 1.000000e+00 : f32
    %12 = vector.broadcast %cst_13 : f32 to vector<128x32xf32>
    %13 = arith.addf %12, %11 : vector<128x32xf32>
    %14 = arith.divf %12, %13 : vector<128x32xf32>
    %15 = arith.mulf %9, %14 : vector<128x32xf32>
    %cst_14 = arith.constant dense<0.000000e+00> : vector<128x32xf32>
    %16 = tpu.matmul %15, %2, %cst_14 {dimension_numbers = #tpu.dot_dimension_numbers<[1], [0], [0], [1], [0, 0, 1, 1], [], []>} : vector<128x32xf32>, vector<32x32xf32>, vector<128x32xf32> -> vector<128x32xf32>
    %17 = vector.broadcast %3 : vector<1x32xf32> to vector<128x32xf32>
    %18 = arith.addf %16, %17 : vector<128x32xf32>
    %19 = arith.negf %18 : vector<128x32xf32>
    %20 = math.exp %19 : vector<128x32xf32>
    %cst_15 = arith.constant 1.000000e+00 : f32
    %21 = vector.broadcast %cst_15 : f32 to vector<128x32xf32>
    %22 = arith.addf %21, %20 : vector<128x32xf32>
    %23 = arith.divf %21, %22 : vector<128x32xf32>
    %24 = arith.mulf %18, %23 : vector<128x32xf32>
    %cst_16 = arith.constant dense<0.000000e+00> : vector<128x16xf32>
    %25 = tpu.matmul %24, %4, %cst_16 {dimension_numbers = #tpu.dot_dimension_numbers<[1], [0], [0], [1], [0, 0, 1, 1], [], []>} : vector<128x32xf32>, vector<32x16xf32>, vector<128x16xf32> -> vector<128x16xf32>
    %26 = vector.broadcast %5 : vector<1x16xf32> to vector<128x16xf32>
    %27 = arith.addf %25, %26 : vector<128x16xf32>
    %28 = math.tanh %27 : vector<128x16xf32>
    %29 = arith.addf %6, %28 : vector<128x16xf32>
    %c0_17 = arith.constant 0 : index
    %c0_18 = arith.constant 0 : index
    %30 = vector.load %arg8[%c0_17, %c0_18] : memref<128x16xf32, #tpu.memory_space<vmem>>, vector<128x16xf32>
    tpu.vector_store %arg8[%c0_17, %c0_18], %29 {strides = array<i32>} : memref<128x16xf32, #tpu.memory_space<vmem>>, vector<128x16xf32>,
    return
  }
  func.func @transform_0(%arg0: i32) -> (i32, i32) {
    %c0_i32 = arith.constant 0 : i32
    %c0_i32_0 = arith.constant 0 : i32
    return %arg0, %c0_i32 : i32, i32
  }
  func.func @transform_1(%arg0: i32) -> (i32, i32) {
    %c0_i32 = arith.constant 0 : i32
    %c0_i32_0 = arith.constant 0 : i32
    %c0_i32_1 = arith.constant 0 : i32
    return %c0_i32, %c0_i32_0 : i32, i32
  }
  func.func @transform_2(%arg0: i32) -> (i32, i32) {
    %c0_i32 = arith.constant 0 : i32
    %c0_i32_0 = arith.constant 0 : i32
    %c0_i32_1 = arith.constant 0 : i32
    return %c0_i32, %c0_i32_0 : i32, i32
  }
  func.func @transform_3(%arg0: i32) -> (i32, i32) {
    %c0_i32 = arith.constant 0 : i32
    %c0_i32_0 = arith.constant 0 : i32
    %c0_i32_1 = arith.constant 0 : i32
    return %c0_i32, %c0_i32_0 : i32, i32
  }
  func.func @transform_4(%arg0: i32) -> (i32, i32) {
    %c0_i32 = arith.constant 0 : i32
    %c0_i32_0 = arith.constant 0 : i32
    %c0_i32_1 = arith.constant 0 : i32
    return %c0_i32, %c0_i32_0 : i32, i32
  }
  func.func @transform_5(%arg0: i32) -> (i32, i32) {
    %c0_i32 = arith.constant 0 : i32
    %c0_i32_0 = arith.constant 0 : i32
    %c0_i32_1 = arith.constant 0 : i32
    return %c0_i32, %c0_i32_0 : i32, i32
  }
  func.func @transform_6(%arg0: i32) -> (i32, i32) {
    %c0_i32 = arith.constant 0 : i32
    %c0_i32_0 = arith.constant 0 : i32
    %c0_i32_1 = arith.constant 0 : i32
    return %c0_i32, %c0_i32_0 : i32, i32
  }
  func.func @transform_7(%arg0: i32) -> (i32, i32) {
    %c0_i32 = arith.constant 0 : i32
    %c0_i32_0 = arith.constant 0 : i32
    return %arg0, %c0_i32 : i32, i32
  }
}

</mosaic_0001>

<bundles_post_ra>
// kernel: tpu_custom_call.1
= control target key start
LH: loop header
LB: loop body
LE: loop exit
PB: predicated region body
PF: predicated region fallthrough
CT: control target
= control target key end

     0   :  { %vm61_vm0 = vcmask 130048   ;;  %vm373_vm1 = vcmask 261120   ;;  %s1802_s1 = inlined_call_operand.vmem [shape: f32[16,32], index: 1, kind: input, shape index: {}]   ;;  %s1803_s0 = inlined_call_operand.vmem [shape: f32[128,16], index: 0, kind: input, shape index: {}]   ;;  %s1804_s3 = inlined_call_operand.vmem [shape: f32[32,32], index: 3, kind: input, shape index: {}]   ;;  %s1805_s2 = inlined_call_operand.vmem [shape: f32[1,32], index: 2, kind: input, shape index: {}]   ;;  %s1806_s5 = inlined_call_operand.vmem [shape: f32[32,16], index: 5, kind: input, shape index: {}]   ;;  %s1807_s4 = inlined_call_operand.vmem [shape: f32[1,32], index: 4, kind: input, shape index: {}]   ;;  %s1808_s6 = inlined_call_operand.vmem [shape: f32[1,16], index: 6, kind: input, shape index: {}]   ;;  %s1809_s7 = inlined_call_operand.vmem [shape: f32[128,16], index: 7, kind: output, shape index: {}]  }
   0x1   :  { %v26_v0 = vld [vmem:[%s1802_s1] sm:$0xff]  ;;  %v27_v1 = vld [vmem:[%s1802_s1 + $0x8] sm:$0xff]  ;;  %v1418_v7 = vld [vmem:[%s1803_s0 + $0x10] sm:$0xff] }
   0x2   :  { %v1394_v2 = vld [vmem:[%s1803_s0] sm:$0xff]  ;;  %v1163_v3 = vpack.c.bf16 %v27_v1, %v26_v0  ;;  %v1408_v5 = vld [vmem:[%s1803_s0 + $0x8] sm:$0xff]  ;;  %v1423_v8 = vld [vmem:[%s1803_s0 + $0x50] sm:$0xff] }
   0x3   :  { %1075 = vmatprep.mubr.msk.f32.mxu0 %vm61_vm0, %v1394_v2  ;;  %v1401_v4 = vld [vmem:[%s1803_s0 + $0x40] sm:$0xff]  ;;  %v1413_v6 = vld [vmem:[%s1803_s0 + $0x48] sm:$0xff]  ;;  %v1436_v9 = vld [vmem:[%s1803_s0 + $0x18] sm:$0xff] }
   0x4   :  { %1087 = vmatprep.mubr.msk.f32.mxu1 %vm61_vm0, %v1401_v4  ;;  %1164 = vmatprep.subr.bf16.mxu0 %v1163_v3  ;;  %v1441_v10 = vld [vmem:[%s1803_s0 + $0x58] sm:$0xff]  ;;  %v1446_v11 = vld [vmem:[%s1803_s0 + $0x20] sm:$0xff]  ;;  %v1464_v13 = vld [vmem:[%s1803_s0 + $0x28] sm:$0xff] }
   0x5   :  { %1183 = vmatprep.subr.bf16.mxu1 %v1163_v3  ;;  %1166 = vmatpush3.bf16.msra.mxu0 %v1163_v3  ;;  %v1451_v12 = vld [vmem:[%s1803_s0 + $0x60] sm:$0xff]  ;;  %v1469_v14 = vld [vmem:[%s1803_s0 + $0x68] sm:$0xff]  ;;  %v1474_v15 = vld [vmem:[%s1803_s0 + $0x30] sm:$0xff] }
   0x6   :  { %1184 = vmatpush3.bf16.msra.mxu1 %v1163_v3  ;;  %v1479_v16 = vld [vmem:[%s1803_s0 + $0x70] sm:$0xff]  ;;  %v1492_v17 = vld [vmem:[%s1803_s0 + $0x38] sm:$0xff]  ;;  %v29_v19 = vld [vmem:[%s1804_s3] sm:$0xff] }
   0x7   :  { %v1497_v18 = vld [vmem:[%s1803_s0 + $0x78] sm:$0xff]  ;;  %v30_v20 = vld [vmem:[%s1804_s3 + $0x8] sm:$0xff]  ;;  %v31_v22 = vld [vmem:[%s1804_s3 + $0x10] sm:$0xff] }
   0x8   :  { %1076 = vmatmul.mubr.msk.f32.vlgmr.msra.gmra.mrb[0].mxu0 %vm61_vm0, %v1408_v5  ;;  %v1167_v21 = vpack.c.bf16 %v30_v20, %v29_v19  ;;  %v32_v23 = vld [vmem:[%s1804_s3 + $0x18] sm:$0xff]  ;;  %v1518_v25 = vld [vmem:[%s1805_s2] ss:$0 sm:$0xff] }
   0x9   :  { %1088 = vmatmul.mubr.msk.f32.vlgmr.msra.gmra.mrb[0].mxu1 %vm61_vm0, %v1413_v6  ;;  %1078 = vmatprep.mubr.msk.f32.mxu0 %vm61_vm0, %v1418_v7  ;;  %v1171_v24 = vpack.c.bf16 %v32_v23, %v31_v22 }
   0xa   :  { %1090 = vmatprep.mubr.msk.f32.mxu1 %vm61_vm0, %v1423_v8  ;;  %1168 = vmatprep.subr.bf16.mxu1 %v1167_v21 }
   0xb   :  { %1170 = vmatpush3.bf16.msra.mxu1 %v1167_v21 }
   0xc   :  { %1079 = vmatmul.mubr.msk.f32.gmra.mrb[2].mxu0 %vm61_vm0, %v1436_v9  ;;  %1172 = vmatprep.subr.bf16.mxu1 %v1171_v24 }
   0xd   :  { %1091 = vmatmul.mubr.msk.f32.gmra.mrb[2].mxu1 %vm61_vm0, %v1441_v10  ;;  %1081 = vmatprep.mubr.msk.f32.mxu0 %vm61_vm0, %v1446_v11 }
   0xe   :  { %1093 = vmatprep.mubr.msk.f32.mxu1 %vm61_vm0, %v1451_v12 }
   0xf   :  { %1174 = vmatpush3.bf16.msra.mxu1 %v1171_v24 }
  0x10   :  { %1082 = vmatmul.mubr.msk.f32.gmra.mrb[4].mxu0 %vm61_vm0, %v1464_v13 }
  0x11   :  { %1094 = vmatmul.mubr.msk.f32.gmra.mrb[4].mxu1 %vm61_vm0, %v1469_v14  ;;  %1084 = vmatprep.mubr.msk.f32.mxu0 %vm61_vm0, %v1474_v15 }
  0x12   :  { %1096 = vmatprep.mubr.msk.f32.mxu1 %vm61_vm0, %v1479_v16 }
  0x14   :  { %1085 = vmatmul.mubr.msk.f32.gmra.mrb[6].mxu0 %vm61_vm0, %v1492_v17 }
  0x15   :  { %1097 = vmatmul.mubr.msk.f32.gmra.mrb[6].mxu1 %vm61_vm0, %v1497_v18 }
  0xdb   :  { %v1077_v26 = vpop.f32.mrb[0].mxu0 }
  0xdc   :  { %v1089_v27 = vpop.f32.mrb[0].mxu1  ;;  %v1521_v28 = vadd.f32 %v1077_v26, %v1518_v25  ;;  %v176_v29 = vpop.f32.mrb[1].mxu0 }
  0xdd   :  { %v216_v30 = vpop.f32.mrb[1].mxu1  ;;  %v1524_v31 = vadd.f32 %v1518_v25, %v176_v29  ;;  %v1552_v0 = vadd.f32 %v1089_v27, %v1518_v25 }
  0xde   :  { %v948_v32 = vmul.f32 -1.442695, %v1521_v28  ;;  %v1545_v57 = vadd.f32 %v1518_v25, %v216_v30 }
  0xdf   :  { %v947_v33 = vmul.f32 -1.442695, %v1524_v31  ;;  %v1080_v34 = vpop.f32.mrb[2].mxu0  ;;  %v956_v24 = vmul.f32 -1.442695, %v1552_v0 }
  0xe0   :  { %v1092_v35 = vpop.f32.mrb[2].mxu1  ;;  %1185 = vpow2.f32 %v948_v32  ;;  %v1529_v36 = vadd.f32 %v1080_v34, %v1518_v25  ;;  %v186_v37 = vpop.f32.mrb[3].mxu0  ;;  %v955_v63 = vmul.f32 -1.442695, %v1545_v57 }
  0xe1   :  { %v226_v38 = vpop.f32.mrb[3].mxu1  ;;  %v1532_v39 = vadd.f32 %v1518_v25, %v186_v37  ;;  %1187 = vpow2.f32 %v947_v33  ;;  %v1563_v27 = vadd.f32 %v1092_v35, %v1518_v25 }
  0xe2   :  { %v950_v40 = vmul.f32 -1.442695, %v1529_v36  ;;  %v1556_v20 = vadd.f32 %v1518_v25, %v226_v38 }
  0xe3   :  { %v949_v41 = vmul.f32 -1.442695, %v1532_v39  ;;  %v1083_v42 = vpop.f32.mrb[4].mxu0  ;;  %v958_v38 = vmul.f32 -1.442695, %v1563_v27 }
  0xe4   :  { %v1095_v43 = vpop.f32.mrb[4].mxu1  ;;  %1189 = vpow2.f32 %v950_v40  ;;  %v1537_v44 = vadd.f32 %v1083_v42, %v1518_v25  ;;  %v196_v45 = vpop.f32.mrb[5].mxu0  ;;  %v957_v29 = vmul.f32 -1.442695, %v1556_v20 }
  0xe5   :  { %v236_v46 = vpop.f32.mrb[5].mxu1  ;;  %v1540_v47 = vadd.f32 %v1518_v25, %v196_v45  ;;  %1191 = vpow2.f32 %v949_v41  ;;  %v1573_v35 = vadd.f32 %v1095_v43, %v1518_v25 }
  0xe6   :  { %v952_v48 = vmul.f32 -1.442695, %v1537_v44  ;;  %v1567_v30 = vadd.f32 %v1518_v25, %v236_v46 }
  0xe7   :  { %v951_v49 = vmul.f32 -1.442695, %v1540_v47  ;;  %v1086_v50 = vpop.f32.mrb[6].mxu0  ;;  %v960_v43 = vmul.f32 -1.442695, %v1573_v35 }
  0xe8   :  { %v1098_v51 = vpop.f32.mrb[6].mxu1  ;;  %1193 = vpow2.f32 %v952_v48  ;;  %v206_v52 = vpop.f32.mrb[7].mxu0  ;;  %v1548_v59 = vadd.f32 %v1086_v50, %v1518_v25  ;;  %v959_v41 = vmul.f32 -1.442695, %v1567_v30 }
  0xe9   :  { %v246_v53 = vpop.f32.mrb[7].mxu1  ;;  %1195 = vpow2.f32 %v951_v49  ;;  %v1559_v22 = vadd.f32 %v1518_v25, %v206_v52 }
  0xea   :  { %v1186_v54 = vpop.eup %1185  ;;  %v954_v3 = vmul.f32 -1.442695, %v1548_v59  ;;  %v1578_v42 = vadd.f32 %v1518_v25, %v246_v53 }
  0xeb   :  { %v304_v55 = vadd.f32 1.0, %v1186_v54  ;;  %v1188_v56 = vpop.eup %1187  ;;  %v953_v32 = vmul.f32 -1.442695, %v1559_v22 }
  0xec   :  { %v303_v58 = vadd.f32 1.0, %v1188_v56  ;;  %v961_v52 = vmul.f32 -1.442695, %v1578_v42 }
  0xed   :  { %1197 = vrcp.f32 %v304_v55 }
  0xee   :  { %v1190_v60 = vpop.eup %1189  ;;  %1199 = vrcp.f32 %v303_v58 }
  0xef   :  { %v306_v61 = vadd.f32 1.0, %v1190_v60  ;;  %v1192_v62 = vpop.eup %1191 }
  0xf0   :  { %v305_v1 = vadd.f32 1.0, %v1192_v62 }
  0xf1   :  { %1201 = vrcp.f32 %v306_v61 }
  0xf2   :  { %v1194_v19 = vpop.eup %1193  ;;  %1203 = vrcp.f32 %v305_v1 }
  0xf3   :  { %v308_v21 = vadd.f32 1.0, %v1194_v19  ;;  %v1196_v23 = vpop.eup %1195  ;;  %1205 = vpow2.f32 %v955_v63 }
  0xf4   :  { %v307_v26 = vadd.f32 1.0, %v1196_v23  ;;  %1207 = vpow2.f32 %v954_v3 }
  0xf5   :  { %1209 = vrcp.f32 %v308_v21 }
  0xf6   :  { %1211 = vrcp.f32 %v307_v26 }
  0xf7   :  { %v1198_v33 = vpop.eup %1197  ;;  %1213 = vpow2.f32 %v956_v24 }
  0xf8   :  { %v1200_v34 = vpop.eup %1199  ;;  %1215 = vpow2.f32 %v957_v29  ;;  %v352_v40 = vmul.f32 %v1198_v33, %v1521_v28  ;;  %v1585_v28 = vadd.f32 %v1098_v51, %v1518_v25 }
  0xf9   :  { %v351_v37 = vmul.f32 %v1200_v34, %v1524_v31  ;;  %1217 = vpow2.f32 %v953_v32 }
  0xfa   :  { %1219 = vpow2.f32 %v958_v38  ;;  %v962_v56 = vmul.f32 -1.442695, %v1585_v28 }
  0xfb   :  { %v1202_v45 = vpop.eup %1201  ;;  %1107 = vmatprep.mubr.msk.f32.mxu1 %vm373_vm1, %v351_v37  ;;  %1221 = vpow2.f32 %v959_v41 }
  0xfc   :  { %v1204_v46 = vpop.eup %1203  ;;  %1108 = vmatmul.mubr.msk.f32.vlgmr.msra.gmra.mrb[8].mxu1 %vm373_vm1, %v352_v40  ;;  %v354_v50 = vmul.f32 %v1202_v45, %v1529_v36  ;;  %1223 = vpow2.f32 %v960_v43 }
  0xfd   :  { %v1206_v31 = vpop.eup %1205  ;;  %v353_v48 = vmul.f32 %v1204_v46, %v1532_v39  ;;  %1225 = vpow2.f32 %v961_v52 }
  0xfe   :  { %v1208_v49 = vpop.eup %1207  ;;  %v311_v55 = vadd.f32 1.0, %v1206_v31 }
  0xff   :  { %v1210_v53 = vpop.eup %1209  ;;  %1110 = vmatprep.mubr.msk.f32.mxu1 %vm373_vm1, %v353_v48  ;;  %v310_v58 = vadd.f32 1.0, %v1208_v49 }
 0x100   :  { %v1212_v54 = vpop.eup %1211  ;;  %1111 = vmatmul.mubr.msk.f32.gmra.mrb[10].mxu1 %vm373_vm1, %v354_v50  ;;  %v356_v51 = vmul.f32 %v1210_v53, %v1537_v44  ;;  %1227 = vrcp.f32 %v311_v55 }
 0x101   :  { %v355_v39 = vmul.f32 %v1212_v54, %v1540_v47  ;;  %v1214_v25 = vpop.eup %1213  ;;  %1229 = vpow2.f32 %v962_v56  ;;  %v1631_v54 = vld [vmem:[%s1807_s4] ss:$0 sm:$0xff] }
 0x102   :  { %v1216_v36 = vpop.eup %1215  ;;  %v312_v62 = vadd.f32 1.0, %v1214_v25  ;;  %1231 = vrcp.f32 %v310_v58 }
 0x103   :  { %1113 = vmatprep.mubr.msk.f32.mxu1 %vm373_vm1, %v355_v39  ;;  %v1218_v60 = vpop.eup %1217  ;;  %v313_v47 = vadd.f32 1.0, %v1216_v36 }
 0x104   :  { %1114 = vmatmul.mubr.msk.f32.gmra.mrb[12].mxu1 %vm373_vm1, %v356_v51  ;;  %v309_v61 = vadd.f32 1.0, %v1218_v60  ;;  %v1220_v63 = vpop.eup %1219 }
 0x105   :  { %v1222_v1 = vpop.eup %1221  ;;  %v314_v3 = vadd.f32 1.0, %v1220_v63 }
 0x106   :  { %1233 = vrcp.f32 %v309_v61  ;;  %v1224_v44 = vpop.eup %1223  ;;  %v315_v19 = vadd.f32 1.0, %v1222_v1 }
 0x107   :  { %1235 = vrcp.f32 %v312_v62  ;;  %v1226_v21 = vpop.eup %1225  ;;  %v316_v24 = vadd.f32 1.0, %v1224_v44 }
 0x108   :  { %1237 = vrcp.f32 %v313_v47  ;;  %v317_v29 = vadd.f32 1.0, %v1226_v21 }
 0x109   :  { %1239 = vrcp.f32 %v314_v3 }
 0x10a   :  { %v1228_v23 = vpop.eup %1227  ;;  %1241 = vrcp.f32 %v315_v19 }
 0x10b   :  { %v1230_v26 = vpop.eup %1229  ;;  %1243 = vrcp.f32 %v316_v24  ;;  %v359_v41 = vmul.f32 %v1228_v23, %v1545_v57 }
 0x10c   :  { %v1232_v32 = vpop.eup %1231  ;;  %v318_v34 = vadd.f32 1.0, %v1230_v26  ;;  %1245 = vrcp.f32 %v317_v29 }
 0x10d   :  { %v358_v38 = vmul.f32 %v1232_v32, %v1548_v59 }
 0x10e   :  { %1247 = vrcp.f32 %v318_v34 }
 0x110   :  { %v1234_v33 = vpop.eup %1233 }
 0x111   :  { %v357_v37 = vmul.f32 %v1234_v33, %v1559_v22  ;;  %v1236_v40 = vpop.eup %1235 }
 0x112   :  { %v1238_v45 = vpop.eup %1237  ;;  %v360_v46 = vmul.f32 %v1236_v40, %v1552_v0 }
 0x113   :  { %1116 = vmatprep.mubr.msk.f32.mxu1 %vm373_vm1, %v357_v37  ;;  %v1240_v31 = vpop.eup %1239  ;;  %v361_v48 = vmul.f32 %v1238_v45, %v1556_v20 }
 0x114   :  { %1117 = vmatmul.mubr.msk.f32.gmra.mrb[14].mxu1 %vm373_vm1, %v358_v38  ;;  %v1242_v22 = vpop.eup %1241  ;;  %v362_v57 = vmul.f32 %v1240_v31, %v1563_v27  ;;  %v34_v27 = vld [vmem:[%s1806_s5] sm:$0xff] }
 0x115   :  { %1119 = vmatprep.mubr.msk.f32.mxu1 %vm373_vm1, %v359_v41  ;;  %v1244_v59 = vpop.eup %1243  ;;  %v363_v43 = vmul.f32 %v1242_v22, %v1567_v30  ;;  %v35_v30 = vld [vmem:[%s1806_s5 + $0x8] sm:$0xff] }
 0x116   :  { %v1246_v49 = vpop.eup %1245  ;;  %v364_v0 = vmul.f32 %v1244_v59, %v1573_v35  ;;  %v1175_v35 = vpack.c.bf16 %v35_v30, %v34_v27 }
 0x117   :  { %v365_v20 = vmul.f32 %v1246_v49, %v1578_v42  ;;  %v36_v42 = vld [vmem:[%s1806_s5 + $0x10] sm:$0xff] }
 0x118   :  { %1120 = vmatmul.mubr.msk.f32.gmra.mrb[16].mxu1 %vm373_vm1, %v360_v46  ;;  %v1248_v50 = vpop.eup %1247  ;;  %1176 = vmatprep.subr.bf16.mxu0 %v1175_v35 }
 0x119   :  { %1122 = vmatprep.mubr.msk.f32.mxu1 %vm373_vm1, %v361_v48  ;;  %v366_v52 = vmul.f32 %v1248_v50, %v1585_v28  ;;  %1178 = vmatpush3.bf16.msra.mxu0 %v1175_v35  ;;  %v37_v28 = vld [vmem:[%s1806_s5 + $0x18] sm:$0xff] }
 0x11a   :  { %v1179_v53 = vpack.c.bf16 %v37_v28, %v36_v42 }
 0x11c   :  { %1123 = vmatmul.mubr.msk.f32.gmra.mrb[18].mxu1 %vm373_vm1, %v362_v57  ;;  %1180 = vmatprep.subr.bf16.mxu0 %v1179_v53 }
 0x11d   :  { %1125 = vmatprep.mubr.msk.f32.mxu1 %vm373_vm1, %v363_v43  ;;  %1182 = vmatpush3.bf16.msra.mxu0 %v1179_v53 }
 0x120   :  { %1126 = vmatmul.mubr.msk.f32.gmra.mrb[20].mxu1 %vm373_vm1, %v364_v0 }
 0x121   :  { %1128 = vmatprep.mubr.msk.f32.mxu1 %vm373_vm1, %v365_v20 }
 0x124   :  { %1129 = vmatmul.mubr.msk.f32.gmra.mrb[22].mxu1 %vm373_vm1, %v366_v52 }
 0x1cf   :  { %v1109_v55 = vpop.f32.mrb[8].mxu1 }
 0x1d0   :  { %v494_v39 = vadd.f32 %v1109_v55, %v1631_v54  ;;  %v488_v56 = vpop.f32.mrb[9].mxu1 }
 0x1d1   :  { %v489_v25 = vadd.f32 %v1631_v54, %v488_v56 }
 0x1d2   :  { %v981_v51 = vmul.f32 -1.442695, %v494_v39 }
 0x1d3   :  { %v980_v58 = vmul.f32 -1.442695, %v489_v25  ;;  %v1112_v36 = vpop.f32.mrb[10].mxu1 }
 0x1d4   :  { %1249 = vpow2.f32 %v981_v51  ;;  %v504_v60 = vadd.f32 %v1112_v36, %v1631_v54  ;;  %v498_v61 = vpop.f32.mrb[11].mxu1 }
 0x1d5   :  { %1251 = vpow2.f32 %v980_v58  ;;  %v499_v62 = vadd.f32 %v1631_v54, %v498_v61 }
 0x1d6   :  { %v983_v63 = vmul.f32 -1.442695, %v504_v60 }
 0x1d7   :  { %v982_v47 = vmul.f32 -1.442695, %v499_v62  ;;  %v1115_v1 = vpop.f32.mrb[12].mxu1 }
 0x1d8   :  { %1253 = vpow2.f32 %v983_v63  ;;  %v1638_v3 = vadd.f32 %v1115_v1, %v1631_v54  ;;  %v508_v44 = vpop.f32.mrb[13].mxu1 }
 0x1d9   :  { %1255 = vpow2.f32 %v982_v47  ;;  %v509_v19 = vadd.f32 %v1631_v54, %v508_v44 }
 0x1da   :  { %v985_v21 = vmul.f32 -1.442695, %v1638_v3 }
 0x1db   :  { %v984_v23 = vmul.f32 -1.442695, %v509_v19 }
 0x1dc   :  { %1257 = vpow2.f32 %v985_v21 }
 0x1dd   :  { %1259 = vpow2.f32 %v984_v23 }
 0x1de   :  { %v1250_v24 = vpop.eup %1249 }
 0x1df   :  { %v1252_v26 = vpop.eup %1251  ;;  %v616_v29 = vadd.f32 1.0, %v1250_v24 }
 0x1e0   :  { %v615_v32 = vadd.f32 1.0, %v1252_v26 }
 0x1e1   :  { %1261 = vrcp.f32 %v616_v29 }
 0x1e2   :  { %v1254_v33 = vpop.eup %1253  ;;  %1263 = vrcp.f32 %v615_v32 }
 0x1e3   :  { %v1256_v34 = vpop.eup %1255  ;;  %v618_v37 = vadd.f32 1.0, %v1254_v33 }
 0x1e4   :  { %v617_v38 = vadd.f32 1.0, %v1256_v34 }
 0x1e5   :  { %1265 = vrcp.f32 %v618_v37 }
 0x1e6   :  { %v1258_v40 = vpop.eup %1257  ;;  %1267 = vrcp.f32 %v617_v38 }
 0x1e7   :  { %v1260_v41 = vpop.eup %1259  ;;  %v620_v45 = vadd.f32 1.0, %v1258_v40  ;;  %v1118_v31 = vpop.f32.mrb[14].mxu1 }
 0x1e8   :  { %v619_v46 = vadd.f32 1.0, %v1260_v41  ;;  %v1643_v48 = vadd.f32 %v1118_v31, %v1631_v54  ;;  %v518_v22 = vpop.f32.mrb[15].mxu1 }
 0x1e9   :  { %1269 = vrcp.f32 %v620_v45  ;;  %v1646_v57 = vadd.f32 %v1631_v54, %v518_v22 }
 0x1ea   :  { %1271 = vrcp.f32 %v619_v46  ;;  %v987_v43 = vmul.f32 -1.442695, %v1643_v48 }
 0x1eb   :  { %v1262_v59 = vpop.eup %1261  ;;  %v986_v0 = vmul.f32 -1.442695, %v1646_v57  ;;  %v1121_v50 = vpop.f32.mrb[16].mxu1 }
 0x1ec   :  { %v1264_v49 = vpop.eup %1263  ;;  %1273 = vpow2.f32 %v987_v43  ;;  %v1651_v52 = vadd.f32 %v1121_v50, %v1631_v54  ;;  %v528_v27 = vpop.f32.mrb[17].mxu1  ;;  %v664_v30 = vmul.f32 %v1262_v59, %v494_v39 }
 0x1ed   :  { %v663_v20 = vmul.f32 %v1264_v49, %v489_v25  ;;  %1275 = vpow2.f32 %v986_v0  ;;  %v1654_v35 = vadd.f32 %v1631_v54, %v528_v27 }
 0x1ee   :  { %v989_v28 = vmul.f32 -1.442695, %v1651_v52 }
 0x1ef   :  { %v1266_v42 = vpop.eup %1265  ;;  %1139 = vmatprep.mubr.msk.f32.mxu0 %vm373_vm1, %v663_v20  ;;  %v988_v55 = vmul.f32 -1.442695, %v1654_v35  ;;  %v1124_v56 = vpop.f32.mrb[18].mxu1 }
 0x1f0   :  { %v1268_v53 = vpop.eup %1267  ;;  %1140 = vmatmul.mubr.msk.f32.vlgmr.msra.gmra.mrb[8].mxu0 %vm373_vm1, %v664_v30  ;;  %1277 = vpow2.f32 %v989_v28  ;;  %v1661_v51 = vadd.f32 %v1124_v56, %v1631_v54  ;;  %v538_v39 = vpop.f32.mrb[19].mxu1  ;;  %v666_v58 = vmul.f32 %v1266_v42, %v504_v60 }
 0x1f1   :  { %v665_v25 = vmul.f32 %v1268_v53, %v499_v62  ;;  %1279 = vpow2.f32 %v988_v55  ;;  %v1664_v36 = vadd.f32 %v1631_v54, %v538_v39 }
 0x1f2   :  { %v991_v63 = vmul.f32 -1.442695, %v1661_v51 }
 0x1f3   :  { %v1270_v61 = vpop.eup %1269  ;;  %1142 = vmatprep.mubr.msk.f32.mxu0 %vm373_vm1, %v665_v25  ;;  %v990_v1 = vmul.f32 -1.442695, %v1664_v36  ;;  %v1127_v44 = vpop.f32.mrb[20].mxu1 }
 0x1f4   :  { %v1272_v47 = vpop.eup %1271  ;;  %1143 = vmatmul.mubr.msk.f32.gmra.mrb[10].mxu0 %vm373_vm1, %v666_v58  ;;  %1281 = vpow2.f32 %v991_v63  ;;  %v1671_v21 = vadd.f32 %v1127_v44, %v1631_v54  ;;  %v548_v60 = vpop.f32.mrb[21].mxu1  ;;  %v668_v23 = vmul.f32 %v1270_v61, %v1638_v3 }
 0x1f5   :  { %v667_v62 = vmul.f32 %v1272_v47, %v509_v19  ;;  %1283 = vpow2.f32 %v990_v1  ;;  %v1675_v24 = vadd.f32 %v1631_v54, %v548_v60 }
 0x1f6   :  { %v1274_v26 = vpop.eup %1273  ;;  %v993_v29 = vmul.f32 -1.442695, %v1671_v21 }
 0x1f7   :  { %1145 = vmatprep.mubr.msk.f32.mxu0 %vm373_vm1, %v667_v62  ;;  %v1276_v32 = vpop.eup %1275  ;;  %v622_v33 = vadd.f32 1.0, %v1274_v26  ;;  %v992_v19 = vmul.f32 -1.442695, %v1675_v24  ;;  %v1130_v34 = vpop.f32.mrb[22].mxu1 }
 0x1f8   :  { %1146 = vmatmul.mubr.msk.f32.gmra.mrb[12].mxu0 %vm373_vm1, %v668_v23  ;;  %v621_v37 = vadd.f32 1.0, %v1276_v32  ;;  %1285 = vpow2.f32 %v993_v29  ;;  %v564_v3 = vadd.f32 %v1130_v34, %v1631_v54  ;;  %v558_v38 = vpop.f32.mrb[23].mxu1 }
 0x1f9   :  { %1287 = vrcp.f32 %v622_v33  ;;  %v559_v40 = vadd.f32 %v1631_v54, %v558_v38 }
 0x1fa   :  { %v1278_v41 = vpop.eup %1277  ;;  %1289 = vrcp.f32 %v621_v37  ;;  %v995_v45 = vmul.f32 -1.442695, %v564_v3 }
 0x1fb   :  { %v1280_v46 = vpop.eup %1279  ;;  %v624_v31 = vadd.f32 1.0, %v1278_v41  ;;  %1291 = vpow2.f32 %v992_v19  ;;  %v994_v22 = vmul.f32 -1.442695, %v559_v40 }
 0x1fc   :  { %v623_v59 = vadd.f32 1.0, %v1280_v46  ;;  %1293 = vpow2.f32 %v995_v45 }
 0x1fd   :  { %1295 = vrcp.f32 %v624_v31 }
 0x1fe   :  { %v1282_v43 = vpop.eup %1281  ;;  %1297 = vrcp.f32 %v623_v59 }
 0x1ff   :  { %v1284_v49 = vpop.eup %1283  ;;  %v626_v0 = vadd.f32 1.0, %v1282_v43  ;;  %1299 = vpow2.f32 %v994_v22 }
 0x200   :  { %v625_v50 = vadd.f32 1.0, %v1284_v49 }
 0x201   :  { %1301 = vrcp.f32 %v626_v0 }
 0x202   :  { %v1286_v20 = vpop.eup %1285  ;;  %1303 = vrcp.f32 %v625_v50 }
 0x203   :  { %v1288_v54 = vpop.eup %1287  ;;  %v628_v27 = vadd.f32 1.0, %v1286_v20 }
 0x204   :  { %v1290_v30 = vpop.eup %1289  ;;  %v670_v55 = vmul.f32 %v1288_v54, %v1643_v48 }
 0x205   :  { %v1292_v42 = vpop.eup %1291  ;;  %v669_v28 = vmul.f32 %v1290_v30, %v1646_v57  ;;  %1305 = vrcp.f32 %v628_v27 }
 0x206   :  { %v1294_v53 = vpop.eup %1293  ;;  %v627_v56 = vadd.f32 1.0, %v1292_v42 }
 0x207   :  { %v1296_v25 = vpop.eup %1295  ;;  %v630_v39 = vadd.f32 1.0, %v1294_v53  ;;  %1148 = vmatprep.mubr.msk.f32.mxu0 %vm373_vm1, %v669_v28 }
 0x208   :  { %v1298_v58 = vpop.eup %1297  ;;  %1307 = vrcp.f32 %v627_v56  ;;  %1149 = vmatmul.mubr.msk.f32.gmra.mrb[14].mxu0 %vm373_vm1, %v670_v55  ;;  %v672_v47 = vmul.f32 %v1296_v25, %v1651_v52 }
 0x209   :  { %v1300_v61 = vpop.eup %1299  ;;  %v671_v63 = vmul.f32 %v1298_v58, %v1654_v35  ;;  %1309 = vrcp.f32 %v630_v39 }
 0x20a   :  { %v629_v1 = vadd.f32 1.0, %v1300_v61 }
 0x20b   :  { %v1302_v57 = vpop.eup %1301  ;;  %1151 = vmatprep.mubr.msk.f32.mxu0 %vm373_vm1, %v671_v63 }
 0x20c   :  { %v1304_v48 = vpop.eup %1303  ;;  %1311 = vrcp.f32 %v629_v1  ;;  %1152 = vmatmul.mubr.msk.f32.gmra.mrb[16].mxu0 %vm373_vm1, %v672_v47  ;;  %v674_v62 = vmul.f32 %v1302_v57, %v1661_v51  ;;  %v1704_v51 = vld [vmem:[%s1808_s6] ss:$0 sm:$0xff] }
 0x20d   :  { %v673_v44 = vmul.f32 %v1304_v48, %v1664_v36 }
 0x20f   :  { %1154 = vmatprep.mubr.msk.f32.mxu0 %vm373_vm1, %v673_v44  ;;  %v1306_v35 = vpop.eup %1305 }
 0x210   :  { %1155 = vmatmul.mubr.msk.f32.gmra.mrb[18].mxu0 %vm373_vm1, %v674_v62  ;;  %v676_v23 = vmul.f32 %v1306_v35, %v1671_v21 }
 0x212   :  { %v1308_v60 = vpop.eup %1307 }
 0x213   :  { %v675_v52 = vmul.f32 %v1308_v60, %v1675_v24  ;;  %v1310_v26 = vpop.eup %1309 }
 0x214   :  { %v678_v36 = vmul.f32 %v1310_v26, %v564_v3 }
 0x215   :  { %1157 = vmatprep.mubr.msk.f32.mxu0 %vm373_vm1, %v675_v52 }
 0x216   :  { %v1312_v29 = vpop.eup %1311  ;;  %1158 = vmatmul.mubr.msk.f32.gmra.mrb[20].mxu0 %vm373_vm1, %v676_v23 }
 0x217   :  { %v677_v32 = vmul.f32 %v1312_v29, %v559_v40 }
 0x219   :  { %1160 = vmatprep.mubr.msk.f32.mxu0 %vm373_vm1, %v677_v32 }
 0x21a   :  { %1161 = vmatmul.mubr.msk.f32.gmra.mrb[22].mxu0 %vm373_vm1, %v678_v36 }
 0x2c3   :  { %v1141_v24 = vpop.f32.mrb[8].mxu0 }
 0x2c4   :  { %v805_v21 = vadd.f32 %v1141_v24, %v1704_v51  ;;  %v799_v33 = vpop.f32.mrb[9].mxu0 }
 0x2c5   :  { %v800_v19 = vadd.f32 %v1704_v51, %v799_v33 }
 0x2c6   :  { %1313 = vtanh.f32 %v805_v21 }
 0x2c7   :  { %1315 = vtanh.f32 %v800_v19  ;;  %v1144_v34 = vpop.f32.mrb[10].mxu0 }
 0x2c8   :  { %v815_v37 = vadd.f32 %v1144_v34, %v1704_v51  ;;  %v809_v3 = vpop.f32.mrb[11].mxu0 }
 0x2c9   :  { %v810_v38 = vadd.f32 %v1704_v51, %v809_v3 }
 0x2ca   :  { %1317 = vtanh.f32 %v815_v37 }
 0x2cb   :  { %1319 = vtanh.f32 %v810_v38  ;;  %v1147_v40 = vpop.f32.mrb[12].mxu0 }
 0x2cc   :  { %v825_v41 = vadd.f32 %v1147_v40, %v1704_v51  ;;  %v819_v45 = vpop.f32.mrb[13].mxu0 }
 0x2cd   :  { %v820_v46 = vadd.f32 %v1704_v51, %v819_v45 }
 0x2ce   :  { %1321 = vtanh.f32 %v825_v41 }
 0x2cf   :  { %1323 = vtanh.f32 %v820_v46 }
 0x2d0   :  { %v1314_v31 = vpop.eup %1313 }
 0x2d1   :  { %v1316_v22 = vpop.eup %1315  ;;  %v895_v59 = vadd.f32 %v1314_v31, %v1408_v5 }
 0x2d2   :  { %v894_v43 = vadd.f32 %v1316_v22, %v1394_v2 }
 0x2d3   :  { %911 = vst.msk [vmem:[%s1809_s7 + $0x8] sm:$0xff] %vm61_vm0, %v895_v59 }
 0x2d4   :  { %v1318_v49 = vpop.eup %1317  ;;  %910 = vst.msk [vmem:[%s1809_s7] sm:$0xff] %vm61_vm0, %v894_v43 }
 0x2d5   :  { %v1320_v0 = vpop.eup %1319  ;;  %v897_v50 = vadd.f32 %v1318_v49, %v1436_v9 }
 0x2d6   :  { %v896_v20 = vadd.f32 %v1320_v0, %v1418_v7 }
 0x2d7   :  { %913 = vst.msk [vmem:[%s1809_s7 + $0x18] sm:$0xff] %vm61_vm0, %v897_v50 }
 0x2d8   :  { %v1322_v2 = vpop.eup %1321  ;;  %912 = vst.msk [vmem:[%s1809_s7 + $0x10] sm:$0xff] %vm61_vm0, %v896_v20 }
 0x2d9   :  { %v1324_v5 = vpop.eup %1323  ;;  %v899_v54 = vadd.f32 %v1322_v2, %v1464_v13 }
 0x2da   :  { %v898_v27 = vadd.f32 %v1324_v5, %v1446_v11 }
 0x2db   :  { %915 = vst.msk [vmem:[%s1809_s7 + $0x28] sm:$0xff] %vm61_vm0, %v899_v54  ;;  %v1150_v7 = vpop.f32.mrb[14].mxu0 }
 0x2dc   :  { %914 = vst.msk [vmem:[%s1809_s7 + $0x20] sm:$0xff] %vm61_vm0, %v898_v27  ;;  %v835_v9 = vadd.f32 %v1150_v7, %v1704_v51  ;;  %v829_v30 = vpop.f32.mrb[15].mxu0 }
 0x2dd   :  { %v830_v42 = vadd.f32 %v1704_v51, %v829_v30 }
 0x2de   :  { %1325 = vtanh.f32 %v835_v9 }
 0x2df   :  { %1327 = vtanh.f32 %v830_v42  ;;  %v1153_v13 = vpop.f32.mrb[16].mxu0 }
 0x2e0   :  { %v845_v11 = vadd.f32 %v1153_v13, %v1704_v51  ;;  %v839_v28 = vpop.f32.mrb[17].mxu0 }
 0x2e1   :  { %v840_v53 = vadd.f32 %v1704_v51, %v839_v28 }
 0x2e2   :  { %1329 = vtanh.f32 %v845_v11 }
 0x2e3   :  { %1331 = vtanh.f32 %v840_v53  ;;  %v1156_v55 = vpop.f32.mrb[18].mxu0 }
 0x2e4   :  { %v855_v56 = vadd.f32 %v1156_v55, %v1704_v51  ;;  %v849_v25 = vpop.f32.mrb[19].mxu0 }
 0x2e5   :  { %v850_v39 = vadd.f32 %v1704_v51, %v849_v25 }
 0x2e6   :  { %1333 = vtanh.f32 %v855_v56 }
 0x2e7   :  { %1335 = vtanh.f32 %v850_v39 }
 0x2e8   :  { %v1326_v58 = vpop.eup %1325 }
 0x2e9   :  { %v1328_v61 = vpop.eup %1327  ;;  %v901_v63 = vadd.f32 %v1326_v58, %v1492_v17  ;;  %v1159_v47 = vpop.f32.mrb[20].mxu0 }
 0x2ea   :  { %v900_v1 = vadd.f32 %v1328_v61, %v1474_v15  ;;  %v865_v57 = vadd.f32 %v1159_v47, %v1704_v51  ;;  %v859_v48 = vpop.f32.mrb[21].mxu0 }
 0x2eb   :  { %917 = vst.msk [vmem:[%s1809_s7 + $0x38] sm:$0xff] %vm61_vm0, %v901_v63  ;;  %v860_v44 = vadd.f32 %v1704_v51, %v859_v48 }
 0x2ec   :  { %v1330_v62 = vpop.eup %1329  ;;  %916 = vst.msk [vmem:[%s1809_s7 + $0x30] sm:$0xff] %vm61_vm0, %v900_v1  ;;  %1337 = vtanh.f32 %v865_v57 }
 0x2ed   :  { %v1332_v17 = vpop.eup %1331  ;;  %v903_v15 = vadd.f32 %v1330_v62, %v1413_v6  ;;  %1339 = vtanh.f32 %v860_v44  ;;  %v1162_v35 = vpop.f32.mrb[22].mxu0 }
 0x2ee   :  { %v902_v60 = vadd.f32 %v1332_v17, %v1401_v4  ;;  %v875_v52 = vadd.f32 %v1162_v35, %v1704_v51  ;;  %v869_v23 = vpop.f32.mrb[23].mxu0 }
 0x2ef   :  { %919 = vst.msk [vmem:[%s1809_s7 + $0x48] sm:$0xff] %vm61_vm0, %v903_v15  ;;  %v870_v26 = vadd.f32 %v1704_v51, %v869_v23 }
 0x2f0   :  { %v1334_v29 = vpop.eup %1333  ;;  %918 = vst.msk [vmem:[%s1809_s7 + $0x40] sm:$0xff] %vm61_vm0, %v902_v60  ;;  %1341 = vtanh.f32 %v875_v52 }
 0x2f1   :  { %v1336_v6 = vpop.eup %1335  ;;  %v905_v4 = vadd.f32 %v1334_v29, %v1441_v10  ;;  %1343 = vtanh.f32 %v870_v26 }
 0x2f2   :  { %v904_v32 = vadd.f32 %v1336_v6, %v1423_v8 }
 0x2f3   :  { %921 = vst.msk [vmem:[%s1809_s7 + $0x58] sm:$0xff] %vm61_vm0, %v905_v4 }
 0x2f4   :  { %920 = vst.msk [vmem:[%s1809_s7 + $0x50] sm:$0xff] %vm61_vm0, %v904_v32 }
 0x2f6   :  { %v1338_v36 = vpop.eup %1337 }
 0x2f7   :  { %v1340_v51 = vpop.eup %1339  ;;  %v907_v24 = vadd.f32 %v1338_v36, %v1469_v14 }
 0x2f8   :  { %v906_v21 = vadd.f32 %v1340_v51, %v1451_v12 }
 0x2f9   :  { %923 = vst.msk [vmem:[%s1809_s7 + $0x68] sm:$0xff] %vm61_vm0, %v907_v24 }
 0x2fa   :  { %v1342_v8 = vpop.eup %1341  ;;  %922 = vst.msk [vmem:[%s1809_s7 + $0x60] sm:$0xff] %vm61_vm0, %v906_v21 }
 0x2fb   :  { %v1344_v10 = vpop.eup %1343  ;;  %v909_v33 = vadd.f32 %v1342_v8, %v1497_v18 }
 0x2fc   :  { %v908_v19 = vadd.f32 %v1344_v10, %v1479_v16 }
 0x2fd   :  { %925 = vst.msk [vmem:[%s1809_s7 + $0x78] sm:$0xff] %vm61_vm0, %v909_v33 }
 0x2fe   :  { %924 = vst.msk [vmem:[%s1809_s7 + $0x70] sm:$0xff] %vm61_vm0, %v908_v19 }

</bundles_post_ra>
